<compile_context>
chip_gen: v6e
topology: v6e:2x2x1
jax: 0.10.0
libtpu: 0.0.40
codegen_flags: <defaults>
</compile_context>

<pallas_src>
import functools
import math

import jax
import jax.numpy as jnp
from jax.experimental import pallas as pl
from jax.experimental.pallas import tpu as pltpu


def _layernorm(x, gamma, beta, eps=1e-5):
    # PyTorch nn.LayerNorm: biased variance over the last dim, eps inside sqrt.
    mean = jnp.mean(x, axis=-1, keepdims=True)
    var = jnp.mean((x - mean) ** 2, axis=-1, keepdims=True)
    return (x - mean) * jax.lax.rsqrt(var + eps) * gamma + beta


def _encoder_kernel(xq_ref, xkv_ref,
                    wq_ref, bq_ref, wkv_ref, bkv_ref,
                    wo_ref, bo_ref,
                    g1_ref, be1_ref,
                    w1_ref, b1_ref, w2_ref, b2_ref,
                    g2_ref, be2_ref,
                    o_ref,
                    k_ref, v_ref, qh_ref, ctx_ref,
                    *, num_heads, compute_dtype):
    cd = compute_dtype
    nh = num_heads
    xq = xq_ref[...]                          # (TQ, H) f32: queries + residual
    tq, hdim = xq.shape
    dh = hdim // nh

    # ---- K/V projection: once per batch element (first query block) --------
    # One fused full-width (S, H) @ (H, 2H) matmul; per-head views are written
    # into VMEM scratch with static lane slices and reused by later query
    # blocks of the same batch element (query-block grid axis is sequential).
    @pl.when(pl.program_id(1) == 0)
    def _():
        kv = jnp.dot(xkv_ref[...], wkv_ref[...],
                     preferred_element_type=jnp.float32) + bkv_ref[...]
        kv = kv.astype(cd)                    # (S, 2H)
        for n in range(nh):                   # static unroll over heads
            k_ref[n] = kv[:, n * dh:(n + 1) * dh]
            v_ref[n] = kv[:, hdim + n * dh:hdim + (n + 1) * dh]

    # ---- Q projection (1/sqrt(dh) already folded into wq/bq on the host) ----
    q = jnp.dot(xq.astype(cd), wq_ref[...],
                preferred_element_type=jnp.float32) + bq_ref[...]    # (TQ, H)
    q = q.astype(cd)
    for n in range(nh):                       # head split via static lane slices
        qh_ref[n] = q[:, n * dh:(n + 1) * dh]

    # ---- scaled dot-product attention (normalization deferred past P@V) ----
    scores = jnp.einsum("nqd,nkd->nqk", qh_ref[...], k_ref[...],
                        preferred_element_type=jnp.float32)          # (nh,TQ,S)
    m = jnp.max(scores, axis=-1, keepdims=True)
    p = jnp.exp(scores - m)
    denom = jnp.sum(p, axis=-1, keepdims=True)
    ctx = jnp.einsum("nqk,nkd->nqd", p.astype(cd), v_ref[...],
                     preferred_element_type=jnp.float32)             # (nh,TQ,dh)
    ctx = ctx * pl.reciprocal(denom, approx=True)    # EUP reciprocal, post-PV

    # ---- merge heads, single (TQ,H)@(H,H) output projection ----------------
    for n in range(nh):
        ctx_ref[:, n * dh:(n + 1) * dh] = ctx[n].astype(cd)
    att = jnp.dot(ctx_ref[...], wo_ref[...],
                  preferred_element_type=jnp.float32) + bo_ref[...]

    # ---- add & norm 1 -------------------------------------------------------
    y = _layernorm(att + xq, g1_ref[...], be1_ref[...])

    # ---- position-wise FFN with leaky_relu (dropout_prob=0 -> identity) -----
    h1 = jnp.dot(y.astype(cd), w1_ref[...],
                 preferred_element_type=jnp.float32) + b1_ref[...]
    h1 = jnp.where(h1 >= 0, h1, 0.01 * h1)            # leaky_relu, slope 0.01
    h2 = jnp.dot(h1.astype(cd), w2_ref[...],
                 preferred_element_type=jnp.float32) + b2_ref[...]

    # ---- add & norm 2 -------------------------------------------------------
    o_ref[...] = _layernorm(h2 + y, g2_ref[...], be2_ref[...])


def _pick_q_block(seq_len, num_heads, requested=None):
    """Query-block size: prefer 128-multiples; bound the f32 scores block."""
    if requested is not None:
        if seq_len % requested:
            raise ValueError("q_block must divide the sequence length")
        return requested
    if seq_len <= 256:
        return seq_len
    # Rough per-block budget for the live f32 scores (nh, TQ, S): ~12 MiB
    # (fits comfortably inside v7x's 64 MiB VMEM with double-buffered inputs).
    cap = max(8, (12 << 20) // (num_heads * seq_len * 4))
    candidates = [d for d in range(8, 257, 8) if seq_len % d == 0 and d <= cap]
    preferred = [d for d in candidates if d % 128 == 0]
    if preferred:
        return max(preferred)
    if candidates:
        return max(candidates)
    # TODO(synk): pad S on the host (with masked keys) or use a flash-style
    # K/V grid axis when no suitable divisor exists.
    return seq_len


def _default_vmem_limit_bytes():
    # ~75% of physical VMEM (128 MiB v5e/v6e, 64 MiB v7x); safe fallback.
    try:
        return int(pltpu.get_tpu_info().vmem_capacity_bytes) * 3 // 4
    except Exception:
        return 48 * 1024 * 1024


def block_transformer_encoder(x, params, num_heads, *,
                              compute_dtype=jnp.bfloat16,
                              q_block=None,
                              weight_buffer_count=None):
    """x: (B, S, H) float32; params: dict (see init_params). Returns (B, S, H) f32."""
    B, S, H = x.shape
    if H % num_heads != 0:
        raise ValueError("hidden_dim must be divisible by num_heads")
    dh = H // num_heads
    TQ = _pick_q_block(S, num_heads, q_block)
    cd = compute_dtype
    scale = 1.0 / math.sqrt(dh)

    # Host-side parameter prep:
    #  * fold 1/sqrt(dh) into Wq/bq (removes a per-step VALU multiply)
    #  * fuse Wk|Wv into one (H, 2H) weight -> single full-width K/V matmul
    #  * matmul weights in compute_dtype; biases / LayerNorm params stay f32.
    wq = (params["wq"] * scale).astype(cd)
    bq = (params["bq"] * scale).astype(jnp.float32)
    wkv = jnp.concatenate([params["wk"], params["wv"]], axis=1).astype(cd)
    bkv = jnp.concatenate([params["bk"], params["bv"]], axis=1).astype(jnp.float32)

    param_list = [
        wq, bq, wkv, bkv,
        params["wo"].astype(cd), params["bo"].astype(jnp.float32),
        params["ln1_g"].astype(jnp.float32), params["ln1_b"].astype(jnp.float32),
        params["w1"].astype(cd), params["b1"].astype(jnp.float32),
        params["w2"].astype(cd), params["b2"].astype(jnp.float32),
        params["ln2_g"].astype(jnp.float32), params["ln2_b"].astype(jnp.float32),
    ]

    x_f32 = x.astype(jnp.float32)   # query rows / residual / LayerNorm path
    x_cd = x.astype(cd)             # K/V path: pre-cast halves the largest DMA

    weight_mode = None
    if weight_buffer_count is not None:
        # Optional: single-buffer the grid-constant weights (halves their VMEM
        # footprint; useful for large H on VMEM-tight chips such as v7x).
        weight_mode = pl.Buffered(buffer_count=weight_buffer_count)

    def const_spec(p):
        zeros = (0,) * p.ndim
        if weight_mode is None:
            return pl.BlockSpec(p.shape, lambda b, s: zeros)
        return pl.BlockSpec(p.shape, lambda b, s: zeros, pipeline_mode=weight_mode)

    in_specs = (
        [pl.BlockSpec((None, TQ, H), lambda b, s: (b, s, 0)),    # query rows (f32)
         pl.BlockSpec((None, S, H), lambda b, s: (b, 0, 0))]     # full seq for K/V (cd)
        + [const_spec(p) for p in param_list])
    out_spec = pl.BlockSpec((None, TQ, H), lambda b, s: (b, s, 0))

    scratch_shapes = [
        pltpu.VMEM((num_heads, S, dh), cd),     # K cache (per batch element)
        pltpu.VMEM((num_heads, S, dh), cd),     # V cache (per batch element)
        pltpu.VMEM((num_heads, TQ, dh), cd),    # per-head Q staging
        pltpu.VMEM((TQ, H), cd),                # merged attention context
    ]

    kernel = functools.partial(_encoder_kernel, num_heads=num_heads,
                               compute_dtype=cd)

    fn = pl.pallas_call(
        kernel,
        out_shape=jax.ShapeDtypeStruct((B, S, H), jnp.float32),
        grid_spec=pltpu.PrefetchScalarGridSpec(
            num_scalar_prefetch=0,
            grid=(B, S // TQ),
            in_specs=in_specs,
            out_specs=out_spec,
            scratch_shapes=scratch_shapes,
        ),
        compiler_params=pltpu.CompilerParams(
            # Batch axis parallel (megacore); query-block axis sequential so the
            # scratch-carried K/V cache is reused across query blocks of a batch.
            dimension_semantics=("parallel", "arbitrary"),
            vmem_limit_bytes=_default_vmem_limit_bytes(),
        ),
    )
    return fn(x_f32, x_cd, *param_list)


def init_params(key, hidden_dim):
    H = hidden_dim
    ks = jax.random.split(key, 16)
    s = 0.1

    def w(k, shape):
        return (s * jax.random.normal(k, shape)).astype(jnp.float32)

    return {
        # Linear layers stored as (in, out); y = x @ W + b
        "wq": w(ks[0], (H, H)),      "bq": w(ks[1], (1, H)),
        "wk": w(ks[2], (H, H)),      "bk": w(ks[3], (1, H)),
        "wv": w(ks[4], (H, H)),      "bv": w(ks[5], (1, H)),
        "wo": w(ks[6], (H, H)),      "bo": w(ks[7], (1, H)),
        "ln1_g": jnp.ones((1, H), jnp.float32),
        "ln1_b": jnp.zeros((1, H), jnp.float32),
        "w1": w(ks[8], (H, 2 * H)),  "b1": w(ks[9], (1, 2 * H)),
        "w2": w(ks[10], (2 * H, H)), "b2": w(ks[11], (1, H)),
        "ln2_g": jnp.ones((1, H), jnp.float32),
        "ln2_b": jnp.zeros((1, H), jnp.float32),
    }


def _reference(x, p, num_heads):
    """Pure-JAX reference mirroring the PyTorch forward (dropout=0)."""
    B, S, H = x.shape
    dh = H // num_heads

    def proj(z, w, b):
        return jnp.einsum("bsh,hk->bsk", z, w) + b[0]

    q = proj(x, p["wq"], p["bq"])
    k = proj(x, p["wk"], p["bk"])
    v = proj(x, p["wv"], p["bv"])

    def split(z):  # (B,S,H) -> (B,nh,S,dh)
        return z.reshape(B, S, num_heads, dh).transpose(0, 2, 1, 3)

    qh, kh, vh = split(q), split(k), split(v)
    scores = jnp.einsum("bnqd,bnkd->bnqk", qh, kh) / math.sqrt(dh)
    attn = jax.nn.softmax(scores, axis=-1)
    ctx = jnp.einsum("bnqk,bnkd->bnqd", attn, vh)
    ctx = ctx.transpose(0, 2, 1, 3).reshape(B, S, H)
    att = proj(ctx, p["wo"], p["bo"])

    def ln(z, g, b):
        mu = jnp.mean(z, -1, keepdims=True)
        var = jnp.mean((z - mu) ** 2, -1, keepdims=True)
        return (z - mu) / jnp.sqrt(var + 1e-5) * g[0] + b[0]

    y = ln(att + x, p["ln1_g"], p["ln1_b"])
    h1 = jnp.einsum("bsh,hk->bsk", y, p["w1"]) + p["b1"][0]
    h1 = jnp.where(h1 >= 0, h1, 0.01 * h1)
    h2 = jnp.einsum("bsh,hk->bsk", h1, p["w2"]) + p["b2"][0]
    return ln(h2 + y, p["ln2_g"], p["ln2_b"])


if __name__ == "__main__":
    key = jax.random.PRNGKey(0)
    kx, kp = jax.random.split(key)

    # Primary test: small shapes consistent with the module (B, S, H) = (2, 8, 32).
    B, S, H, NH = 2, 8, 32, 2
    x = jax.random.normal(kx, (B, S, H), dtype=jnp.float32)
    params = init_params(kp, H)
    ref = _reference(x, params, NH)

    # f32 compute path (tight check; tolerance covers the approx EUP reciprocal).
    out_f32 = jax.block_until_ready(
        block_transformer_encoder(x, params, NH, compute_dtype=jnp.float32))
    assert out_f32.shape == (B, S, H)
    assert jnp.allclose(out_f32, ref, atol=1e-2, rtol=1e-2), \
        "f32 kernel mismatch vs reference"

    # Default bf16 MXU compute path (recommended on v6e/v7x).
    out_bf16 = jax.block_until_ready(
        block_transformer_encoder(x, params, NH))
    assert out_bf16.shape == (B, S, H)
    assert jnp.allclose(out_bf16, ref, atol=5e-2, rtol=5e-2), \
        "bf16 kernel mismatch vs reference"

    # Multi-query-block test: exercises the per-batch K/V cache reuse path
    # (grid = (B, S // TQ) with TQ < S) and a different head count.
    B2, S2, H2, NH2 = 2, 16, 32, 4
    kx2, kp2 = jax.random.split(jax.random.PRNGKey(0), 2)
    x2 = jax.random.normal(kx2, (B2, S2, H2), dtype=jnp.float32)
    params2 = init_params(kp2, H2)
    ref2 = _reference(x2, params2, NH2)
    out2 = jax.block_until_ready(
        block_transformer_encoder(x2, params2, NH2,
                                  compute_dtype=jnp.float32, q_block=8))
    assert out2.shape == (B2, S2, H2)
    assert jnp.allclose(out2, ref2, atol=1e-2, rtol=1e-2), \
        "multi-block kernel mismatch vs reference"

    print("KERNEL_OK")
</pallas_src>

<mosaic_0001>
module attributes {stable_mosaic.version = 11 : i64} {
  func.func @_encoder_kernel(%arg0: i32, %arg1: i32, %arg2: memref<1x8x32xf32, #tpu.memory_space<vmem>>, %arg3: memref<1x8x32xf32, #tpu.memory_space<vmem>>, %arg4: memref<32x32xf32, #tpu.memory_space<vmem>>, %arg5: memref<1x32xf32, #tpu.memory_space<vmem>>, %arg6: memref<32x64xf32, #tpu.memory_space<vmem>>, %arg7: memref<1x64xf32, #tpu.memory_space<vmem>>, %arg8: memref<32x32xf32, #tpu.memory_space<vmem>>, %arg9: memref<1x32xf32, #tpu.memory_space<vmem>>, %arg10: memref<1x32xf32, #tpu.memory_space<vmem>>, %arg11: memref<1x32xf32, #tpu.memory_space<vmem>>, %arg12: memref<32x64xf32, #tpu.memory_space<vmem>>, %arg13: memref<1x64xf32, #tpu.memory_space<vmem>>, %arg14: memref<64x32xf32, #tpu.memory_space<vmem>>, %arg15: memref<1x32xf32, #tpu.memory_space<vmem>>, %arg16: memref<1x32xf32, #tpu.memory_space<vmem>>, %arg17: memref<1x32xf32, #tpu.memory_space<vmem>>, %arg18: memref<1x8x32xf32, #tpu.memory_space<vmem>>, %arg19: memref<2x8x16xf32, #tpu.memory_space<vmem>>, %arg20: memref<2x8x16xf32, #tpu.memory_space<vmem>>, %arg21: memref<2x8x16xf32, #tpu.memory_space<vmem>>, %arg22: memref<8x32xf32, #tpu.memory_space<vmem>>) attributes {dimension_semantics = [#tpu.dimension_semantics<parallel>, #tpu.dimension_semantics<arbitrary>], iteration_bounds = array<i64: 2, 1>, scalar_prefetch = 0 : i64, scratch_operands = 4 : i64, tpu.core_type = #tpu.core_type<tc>, window_params = [{transform_indices = @transform_0, window_bounds = array<i64: 1, 8, 32>}, {transform_indices = @transform_1, window_bounds = array<i64: 1, 8, 32>}, {pipeline_mode = #tpu.pipeline_mode<synchronous>, transform_indices = @transform_2, window_bounds = array<i64: 32, 32>}, {pipeline_mode = #tpu.pipeline_mode<synchronous>, transform_indices = @transform_3, window_bounds = array<i64: 1, 32>}, {pipeline_mode = #tpu.pipeline_mode<synchronous>, transform_indices = @transform_4, window_bounds = array<i64: 32, 64>}, {pipeline_mode = #tpu.pipeline_mode<synchronous>, transform_indices = @transform_5, window_bounds = array<i64: 1, 64>}, {pipeline_mode = #tpu.pipeline_mode<synchronous>, transform_indices = @transform_6, window_bounds = array<i64: 32, 32>}, {pipeline_mode = #tpu.pipeline_mode<synchronous>, transform_indices = @transform_7, window_bounds = array<i64: 1, 32>}, {pipeline_mode = #tpu.pipeline_mode<synchronous>, transform_indices = @transform_8, window_bounds = array<i64: 1, 32>}, {pipeline_mode = #tpu.pipeline_mode<synchronous>, transform_indices = @transform_9, window_bounds = array<i64: 1, 32>}, {pipeline_mode = #tpu.pipeline_mode<synchronous>, transform_indices = @transform_10, window_bounds = array<i64: 32, 64>}, {pipeline_mode = #tpu.pipeline_mode<synchronous>, transform_indices = @transform_11, window_bounds = array<i64: 1, 64>}, {pipeline_mode = #tpu.pipeline_mode<synchronous>, transform_indices = @transform_12, window_bounds = array<i64: 64, 32>}, {pipeline_mode = #tpu.pipeline_mode<synchronous>, transform_indices = @transform_13, window_bounds = array<i64: 1, 32>}, {pipeline_mode = #tpu.pipeline_mode<synchronous>, transform_indices = @transform_14, window_bounds = array<i64: 1, 32>}, {pipeline_mode = #tpu.pipeline_mode<synchronous>, transform_indices = @transform_15, window_bounds = array<i64: 1, 32>}, {transform_indices = @transform_16, window_bounds = array<i64: 1, 8, 32>}]} {
    %c0 = arith.constant 0 : index
    %c0_0 = arith.constant 0 : index
    %c0_1 = arith.constant 0 : index
    %0 = vector.load %arg2[%c0, %c0_0, %c0_1] : memref<1x8x32xf32, #tpu.memory_space<vmem>>, vector<1x8x32xf32>
    %1 = vector.shape_cast %0 : vector<1x8x32xf32> to vector<8x32xf32>
    %c0_i32 = arith.constant 0 : i32
    %2 = arith.cmpi eq, %arg1, %c0_i32 : i32
    %3 = arith.extui %2 : i1 to i32
    %c0_i32_2 = arith.constant 0 : i32
    %4 = arith.cmpi ne, %3, %c0_i32_2 : i32
    scf.if %4 {
      %c0_68 = arith.constant 0 : index
      %c0_69 = arith.constant 0 : index
      %c0_70 = arith.constant 0 : index
      %113 = vector.load %arg3[%c0_68, %c0_69, %c0_70] : memref<1x8x32xf32, #tpu.memory_space<vmem>>, vector<1x8x32xf32>
      %114 = vector.shape_cast %113 : vector<1x8x32xf32> to vector<8x32xf32>
      %c0_71 = arith.constant 0 : index
      %c0_72 = arith.constant 0 : index
      %115 = vector.load %arg6[%c0_71, %c0_72] : memref<32x64xf32, #tpu.memory_space<vmem>>, vector<32x64xf32>
      %cst_73 = arith.constant dense<0.000000e+00> : vector<8x64xf32>
      %116 = tpu.matmul %114, %115, %cst_73 {dimension_numbers = #tpu.dot_dimension_numbers<[1], [0], [0], [1], [0, 0, 1, 1], [], []>} : vector<8x32xf32>, vector<32x64xf32>, vector<8x64xf32> -> vector<8x64xf32>
      %c0_74 = arith.constant 0 : index
      %c0_75 = arith.constant 0 : index
      %117 = vector.load %arg7[%c0_74, %c0_75] : memref<1x64xf32, #tpu.memory_space<vmem>>, vector<1x64xf32>
      %118 = vector.broadcast %117 : vector<1x64xf32> to vector<8x64xf32>
      %119 = arith.addf %116, %118 : vector<8x64xf32>
      %120 = vector.extract_strided_slice %119 {offsets = [0, 0], sizes = [8, 16], strides = [1, 1]} : vector<8x64xf32> to vector<8x16xf32>
      %c0_76 = arith.constant 0 : index
      %c0_77 = arith.constant 0 : index
      %c0_78 = arith.constant 0 : index
      %121 = vector.load %arg19[%c0_76, %c0_77, %c0_78] : memref<2x8x16xf32, #tpu.memory_space<vmem>>, vector<1x8x16xf32>
      %122 = vector.shape_cast %121 : vector<1x8x16xf32> to vector<8x16xf32>
      %123 = vector.shape_cast %120 : vector<8x16xf32> to vector<1x8x16xf32>
      tpu.vector_store %arg19[%c0_76, %c0_77, %c0_78], %123 {strides = array<i32>} : memref<2x8x16xf32, #tpu.memory_space<vmem>>, vector<1x8x16xf32>,
      %124 = vector.extract_strided_slice %119 {offsets = [0, 32], sizes = [8, 16], strides = [1, 1]} : vector<8x64xf32> to vector<8x16xf32>
      %c0_79 = arith.constant 0 : index
      %c0_80 = arith.constant 0 : index
      %c0_81 = arith.constant 0 : index
      %125 = vector.load %arg20[%c0_79, %c0_80, %c0_81] : memref<2x8x16xf32, #tpu.memory_space<vmem>>, vector<1x8x16xf32>
      %126 = vector.shape_cast %125 : vector<1x8x16xf32> to vector<8x16xf32>
      %127 = vector.shape_cast %124 : vector<8x16xf32> to vector<1x8x16xf32>
      tpu.vector_store %arg20[%c0_79, %c0_80, %c0_81], %127 {strides = array<i32>} : memref<2x8x16xf32, #tpu.memory_space<vmem>>, vector<1x8x16xf32>,
      %128 = vector.extract_strided_slice %119 {offsets = [0, 16], sizes = [8, 16], strides = [1, 1]} : vector<8x64xf32> to vector<8x16xf32>
      %c1_82 = arith.constant 1 : index
      %c0_83 = arith.constant 0 : index
      %c0_84 = arith.constant 0 : index
      %129 = vector.load %arg19[%c1_82, %c0_83, %c0_84] : memref<2x8x16xf32, #tpu.memory_space<vmem>>, vector<1x8x16xf32>
      %130 = vector.shape_cast %129 : vector<1x8x16xf32> to vector<8x16xf32>
      %131 = vector.shape_cast %128 : vector<8x16xf32> to vector<1x8x16xf32>
      tpu.vector_store %arg19[%c1_82, %c0_83, %c0_84], %131 {strides = array<i32>} : memref<2x8x16xf32, #tpu.memory_space<vmem>>, vector<1x8x16xf32>,
      %132 = vector.extract_strided_slice %119 {offsets = [0, 48], sizes = [8, 16], strides = [1, 1]} : vector<8x64xf32> to vector<8x16xf32>
      %c1_85 = arith.constant 1 : index
      %c0_86 = arith.constant 0 : index
      %c0_87 = arith.constant 0 : index
      %133 = vector.load %arg20[%c1_85, %c0_86, %c0_87] : memref<2x8x16xf32, #tpu.memory_space<vmem>>, vector<1x8x16xf32>
      %134 = vector.shape_cast %133 : vector<1x8x16xf32> to vector<8x16xf32>
      %135 = vector.shape_cast %132 : vector<8x16xf32> to vector<1x8x16xf32>
      tpu.vector_store %arg20[%c1_85, %c0_86, %c0_87], %135 {strides = array<i32>} : memref<2x8x16xf32, #tpu.memory_space<vmem>>, vector<1x8x16xf32>,
    } else {
    }
    %c0_3 = arith.constant 0 : index
    %c0_4 = arith.constant 0 : index
    %5 = vector.load %arg4[%c0_3, %c0_4] : memref<32x32xf32, #tpu.memory_space<vmem>>, vector<32x32xf32>
    %cst = arith.constant dense<0.000000e+00> : vector<8x32xf32>
    %6 = tpu.matmul %1, %5, %cst {dimension_numbers = #tpu.dot_dimension_numbers<[1], [0], [0], [1], [0, 0, 1, 1], [], []>} : vector<8x32xf32>, vector<32x32xf32>, vector<8x32xf32> -> vector<8x32xf32>
    %c0_5 = arith.constant 0 : index
    %c0_6 = arith.constant 0 : index
    %7 = vector.load %arg5[%c0_5, %c0_6] : memref<1x32xf32, #tpu.memory_space<vmem>>, vector<1x32xf32>
    %8 = vector.broadcast %7 : vector<1x32xf32> to vector<8x32xf32>
    %9 = arith.addf %6, %8 : vector<8x32xf32>
    %10 = vector.extract_strided_slice %9 {offsets = [0, 0], sizes = [8, 16], strides = [1, 1]} : vector<8x32xf32> to vector<8x16xf32>
    %c0_7 = arith.constant 0 : index
    %c0_8 = arith.constant 0 : index
    %c0_9 = arith.constant 0 : index
    %11 = vector.load %arg21[%c0_7, %c0_8, %c0_9] : memref<2x8x16xf32, #tpu.memory_space<vmem>>, vector<1x8x16xf32>
    %12 = vector.shape_cast %11 : vector<1x8x16xf32> to vector<8x16xf32>
    %13 = vector.shape_cast %10 : vector<8x16xf32> to vector<1x8x16xf32>
    tpu.vector_store %arg21[%c0_7, %c0_8, %c0_9], %13 {strides = array<i32>} : memref<2x8x16xf32, #tpu.memory_space<vmem>>, vector<1x8x16xf32>,
    %14 = vector.extract_strided_slice %9 {offsets = [0, 16], sizes = [8, 16], strides = [1, 1]} : vector<8x32xf32> to vector<8x16xf32>
    %c1 = arith.constant 1 : index
    %c0_10 = arith.constant 0 : index
    %c0_11 = arith.constant 0 : index
    %15 = vector.load %arg21[%c1, %c0_10, %c0_11] : memref<2x8x16xf32, #tpu.memory_space<vmem>>, vector<1x8x16xf32>
    %16 = vector.shape_cast %15 : vector<1x8x16xf32> to vector<8x16xf32>
    %17 = vector.shape_cast %14 : vector<8x16xf32> to vector<1x8x16xf32>
    tpu.vector_store %arg21[%c1, %c0_10, %c0_11], %17 {strides = array<i32>} : memref<2x8x16xf32, #tpu.memory_space<vmem>>, vector<1x8x16xf32>,
    %c0_12 = arith.constant 0 : index
    %c0_13 = arith.constant 0 : index
    %c0_14 = arith.constant 0 : index
    %18 = vector.load %arg21[%c0_12, %c0_13, %c0_14] : memref<2x8x16xf32, #tpu.memory_space<vmem>>, vector<2x8x16xf32>
    %c0_15 = arith.constant 0 : index
    %c0_16 = arith.constant 0 : index
    %c0_17 = arith.constant 0 : index
    %19 = vector.load %arg19[%c0_15, %c0_16, %c0_17] : memref<2x8x16xf32, #tpu.memory_space<vmem>>, vector<2x8x16xf32>
    "tpu.trace_start"() <{level = 10 : i32, message = "nqd,nkd->nqk"}> : () -> ()
    %cst_18 = arith.constant dense<0.000000e+00> : vector<2x8x8xf32>
    %20 = tpu.matmul %18, %19, %cst_18 {dimension_numbers = #tpu.dot_dimension_numbers<[2], [2], [1], [1], [0, 0, 0, 1, 1, 1], [0], [0]>} : vector<2x8x16xf32>, vector<2x8x16xf32>, vector<2x8x8xf32> -> vector<2x8x8xf32>
    "tpu.trace_stop"() : () -> ()
    %cst_19 = arith.constant dense<0xFF800000> : vector<2x8xf32>
    %21 = vector.multi_reduction <maximumf>, %20, %cst_19 [2] : vector<2x8x8xf32> to vector<2x8xf32>
    %22 = vector.shape_cast %21 : vector<2x8xf32> to vector<2x8x1xf32>
    %23 = vector.broadcast %22 : vector<2x8x1xf32> to vector<2x8x8xf32>
    %24 = arith.subf %20, %23 : vector<2x8x8xf32>
    %25 = math.exp %24 : vector<2x8x8xf32>
    %cst_20 = arith.constant dense<0.000000e+00> : vector<2x8xf32>
    %26 = vector.multi_reduction <add>, %25, %cst_20 [2] : vector<2x8x8xf32> to vector<2x8xf32>
    %27 = vector.shape_cast %26 : vector<2x8xf32> to vector<2x8x1xf32>
    %c0_21 = arith.constant 0 : index
    %c0_22 = arith.constant 0 : index
    %c0_23 = arith.constant 0 : index
    %28 = vector.load %arg20[%c0_21, %c0_22, %c0_23] : memref<2x8x16xf32, #tpu.memory_space<vmem>>, vector<2x8x16xf32>
    "tpu.trace_start"() <{level = 10 : i32, message = "nqk,nkd->nqd"}> : () -> ()
    %cst_24 = arith.constant dense<0.000000e+00> : vector<2x8x16xf32>
    %29 = tpu.matmul %25, %28, %cst_24 {dimension_numbers = #tpu.dot_dimension_numbers<[2], [1], [1], [2], [0, 0, 0, 1, 1, 2], [0], [0]>} : vector<2x8x8xf32>, vector<2x8x16xf32>, vector<2x8x16xf32> -> vector<2x8x16xf32>
    "tpu.trace_stop"() : () -> ()
    %30 = tpu.reciprocal %27 {approx = true} : vector<2x8x1xf32> -> vector<2x8x1xf32>
    %31 = vector.broadcast %30 : vector<2x8x1xf32> to vector<2x8x16xf32>
    %32 = arith.mulf %29, %31 : vector<2x8x16xf32>
    %33 = vector.extract_strided_slice %32 {offsets = [0, 0, 0], sizes = [1, 8, 16], strides = [1, 1, 1]} : vector<2x8x16xf32> to vector<1x8x16xf32>
    %34 = vector.shape_cast %33 : vector<1x8x16xf32> to vector<8x16xf32>
    %c0_25 = arith.constant 0 : index
    %c0_26 = arith.constant 0 : index
    %35 = vector.load %arg22[%c0_25, %c0_26] : memref<8x32xf32, #tpu.memory_space<vmem>>, vector<8x16xf32>
    tpu.vector_store %arg22[%c0_25, %c0_26], %34 {strides = array<i32>} : memref<8x32xf32, #tpu.memory_space<vmem>>, vector<8x16xf32>,
    %36 = vector.extract_strided_slice %32 {offsets = [1, 0, 0], sizes = [1, 8, 16], strides = [1, 1, 1]} : vector<2x8x16xf32> to vector<1x8x16xf32>
    %37 = vector.shape_cast %36 : vector<1x8x16xf32> to vector<8x16xf32>
    %c0_27 = arith.constant 0 : index
    %c16 = arith.constant 16 : index
    %38 = vector.load %arg22[%c0_27, %c16] : memref<8x32xf32, #tpu.memory_space<vmem>>, vector<8x16xf32>
    tpu.vector_store %arg22[%c0_27, %c16], %37 {strides = array<i32>} : memref<8x32xf32, #tpu.memory_space<vmem>>, vector<8x16xf32>,
    %c0_28 = arith.constant 0 : index
    %c0_29 = arith.constant 0 : index
    %39 = vector.load %arg22[%c0_28, %c0_29] : memref<8x32xf32, #tpu.memory_space<vmem>>, vector<8x32xf32>
    %c0_30 = arith.constant 0 : index
    %c0_31 = arith.constant 0 : index
    %40 = vector.load %arg8[%c0_30, %c0_31] : memref<32x32xf32, #tpu.memory_space<vmem>>, vector<32x32xf32>
    %cst_32 = arith.constant dense<0.000000e+00> : vector<8x32xf32>
    %41 = tpu.matmul %39, %40, %cst_32 {dimension_numbers = #tpu.dot_dimension_numbers<[1], [0], [0], [1], [0, 0, 1, 1], [], []>} : vector<8x32xf32>, vector<32x32xf32>, vector<8x32xf32> -> vector<8x32xf32>
    %c0_33 = arith.constant 0 : index
    %c0_34 = arith.constant 0 : index
    %42 = vector.load %arg9[%c0_33, %c0_34] : memref<1x32xf32, #tpu.memory_space<vmem>>, vector<1x32xf32>
    %43 = vector.broadcast %42 : vector<1x32xf32> to vector<8x32xf32>
    %44 = arith.addf %41, %43 : vector<8x32xf32>
    %45 = arith.addf %44, %1 : vector<8x32xf32>
    %c0_35 = arith.constant 0 : index
    %c0_36 = arith.constant 0 : index
    %46 = vector.load %arg10[%c0_35, %c0_36] : memref<1x32xf32, #tpu.memory_space<vmem>>, vector<1x32xf32>
    %c0_37 = arith.constant 0 : index
    %c0_38 = arith.constant 0 : index
    %47 = vector.load %arg11[%c0_37, %c0_38] : memref<1x32xf32, #tpu.memory_space<vmem>>, vector<1x32xf32>
    %cst_39 = arith.constant dense<0.000000e+00> : vector<8xf32>
    %48 = vector.multi_reduction <add>, %45, %cst_39 [1] : vector<8x32xf32> to vector<8xf32>
    %49 = vector.shape_cast %48 : vector<8xf32> to vector<8x1xf32>
    %cst_40 = arith.constant 3.200000e+01 : f32
    %50 = vector.broadcast %cst_40 : f32 to vector<8x1xf32>
    %51 = arith.divf %49, %50 : vector<8x1xf32>
    %52 = vector.broadcast %51 : vector<8x1xf32> to vector<8x32xf32>
    %53 = arith.subf %45, %52 : vector<8x32xf32>
    %54 = arith.mulf %53, %53 : vector<8x32xf32>
    %cst_41 = arith.constant dense<0.000000e+00> : vector<8xf32>
    %55 = vector.multi_reduction <add>, %54, %cst_41 [1] : vector<8x32xf32> to vector<8xf32>
    %56 = vector.shape_cast %55 : vector<8xf32> to vector<8x1xf32>
    %cst_42 = arith.constant 3.200000e+01 : f32
    %57 = vector.broadcast %cst_42 : f32 to vector<8x1xf32>
    %58 = arith.divf %56, %57 : vector<8x1xf32>
    %59 = vector.broadcast %51 : vector<8x1xf32> to vector<8x32xf32>
    %60 = arith.subf %45, %59 : vector<8x32xf32>
    %cst_43 = arith.constant 9.99999974E-6 : f32
    %61 = vector.broadcast %cst_43 : f32 to vector<8x1xf32>
    %62 = arith.addf %58, %61 : vector<8x1xf32>
    %63 = math.rsqrt %62 : vector<8x1xf32>
    %64 = vector.broadcast %63 : vector<8x1xf32> to vector<8x32xf32>
    %65 = arith.mulf %60, %64 : vector<8x32xf32>
    %66 = vector.broadcast %46 : vector<1x32xf32> to vector<8x32xf32>
    %67 = arith.mulf %65, %66 : vector<8x32xf32>
    %68 = vector.broadcast %47 : vector<1x32xf32> to vector<8x32xf32>
    %69 = arith.addf %67, %68 : vector<8x32xf32>
    %c0_44 = arith.constant 0 : index
    %c0_45 = arith.constant 0 : index
    %70 = vector.load %arg12[%c0_44, %c0_45] : memref<32x64xf32, #tpu.memory_space<vmem>>, vector<32x64xf32>
    %cst_46 = arith.constant dense<0.000000e+00> : vector<8x64xf32>
    %71 = tpu.matmul %69, %70, %cst_46 {dimension_numbers = #tpu.dot_dimension_numbers<[1], [0], [0], [1], [0, 0, 1, 1], [], []>} : vector<8x32xf32>, vector<32x64xf32>, vector<8x64xf32> -> vector<8x64xf32>
    %c0_47 = arith.constant 0 : index
    %c0_48 = arith.constant 0 : index
    %72 = vector.load %arg13[%c0_47, %c0_48] : memref<1x64xf32, #tpu.memory_space<vmem>>, vector<1x64xf32>
    %73 = vector.broadcast %72 : vector<1x64xf32> to vector<8x64xf32>
    %74 = arith.addf %71, %73 : vector<8x64xf32>
    %cst_49 = arith.constant 0.000000e+00 : f32
    %75 = vector.broadcast %cst_49 : f32 to vector<8x64xf32>
    %76 = arith.cmpf oge, %74, %75 : vector<8x64xf32>
    %cst_50 = arith.constant 0.00999999977 : f32
    %77 = vector.broadcast %cst_50 : f32 to vector<8x64xf32>
    %78 = arith.mulf %77, %74 : vector<8x64xf32>
    %79 = arith.select %76, %74, %78 : vector<8x64xi1>, vector<8x64xf32>
    %c0_51 = arith.constant 0 : index
    %c0_52 = arith.constant 0 : index
    %80 = vector.load %arg14[%c0_51, %c0_52] : memref<64x32xf32, #tpu.memory_space<vmem>>, vector<64x32xf32>
    %cst_53 = arith.constant dense<0.000000e+00> : vector<8x32xf32>
    %81 = tpu.matmul %79, %80, %cst_53 {dimension_numbers = #tpu.dot_dimension_numbers<[1], [0], [0], [1], [0, 0, 1, 1], [], []>} : vector<8x64xf32>, vector<64x32xf32>, vector<8x32xf32> -> vector<8x32xf32>
    %c0_54 = arith.constant 0 : index
    %c0_55 = arith.constant 0 : index
    %82 = vector.load %arg15[%c0_54, %c0_55] : memref<1x32xf32, #tpu.memory_space<vmem>>, vector<1x32xf32>
    %83 = vector.broadcast %82 : vector<1x32xf32> to vector<8x32xf32>
    %84 = arith.addf %81, %83 : vector<8x32xf32>
    %85 = arith.addf %84, %69 : vector<8x32xf32>
    %c0_56 = arith.constant 0 : index
    %c0_57 = arith.constant 0 : index
    %86 = vector.load %arg16[%c0_56, %c0_57] : memref<1x32xf32, #tpu.memory_space<vmem>>, vector<1x32xf32>
    %c0_58 = arith.constant 0 : index
    %c0_59 = arith.constant 0 : index
    %87 = vector.load %arg17[%c0_58, %c0_59] : memref<1x32xf32, #tpu.memory_space<vmem>>, vector<1x32xf32>
    %cst_60 = arith.constant dense<0.000000e+00> : vector<8xf32>
    %88 = vector.multi_reduction <add>, %85, %cst_60 [1] : vector<8x32xf32> to vector<8xf32>
    %89 = vector.shape_cast %88 : vector<8xf32> to vector<8x1xf32>
    %cst_61 = arith.constant 3.200000e+01 : f32
    %90 = vector.broadcast %cst_61 : f32 to vector<8x1xf32>
    %91 = arith.divf %89, %90 : vector<8x1xf32>
    %92 = vector.broadcast %91 : vector<8x1xf32> to vector<8x32xf32>
    %93 = arith.subf %85, %92 : vector<8x32xf32>
    %94 = arith.mulf %93, %93 : vector<8x32xf32>
    %cst_62 = arith.constant dense<0.000000e+00> : vector<8xf32>
    %95 = vector.multi_reduction <add>, %94, %cst_62 [1] : vector<8x32xf32> to vector<8xf32>
    %96 = vector.shape_cast %95 : vector<8xf32> to vector<8x1xf32>
    %cst_63 = arith.constant 3.200000e+01 : f32
    %97 = vector.broadcast %cst_63 : f32 to vector<8x1xf32>
    %98 = arith.divf %96, %97 : vector<8x1xf32>
    %99 = vector.broadcast %91 : vector<8x1xf32> to vector<8x32xf32>
    %100 = arith.subf %85, %99 : vector<8x32xf32>
    %cst_64 = arith.constant 9.99999974E-6 : f32
    %101 = vector.broadcast %cst_64 : f32 to vector<8x1xf32>
    %102 = arith.addf %98, %101 : vector<8x1xf32>
    %103 = math.rsqrt %102 : vector<8x1xf32>
    %104 = vector.broadcast %103 : vector<8x1xf32> to vector<8x32xf32>
    %105 = arith.mulf %100, %104 : vector<8x32xf32>
    %106 = vector.broadcast %86 : vector<1x32xf32> to vector<8x32xf32>
    %107 = arith.mulf %105, %106 : vector<8x32xf32>
    %108 = vector.broadcast %87 : vector<1x32xf32> to vector<8x32xf32>
    %109 = arith.addf %107, %108 : vector<8x32xf32>
    %c0_65 = arith.constant 0 : index
    %c0_66 = arith.constant 0 : index
    %c0_67 = arith.constant 0 : index
    %110 = vector.load %arg18[%c0_65, %c0_66, %c0_67] : memref<1x8x32xf32, #tpu.memory_space<vmem>>, vector<1x8x32xf32>
    %111 = vector.shape_cast %110 : vector<1x8x32xf32> to vector<8x32xf32>
    %112 = vector.shape_cast %109 : vector<8x32xf32> to vector<1x8x32xf32>
    tpu.vector_store %arg18[%c0_65, %c0_66, %c0_67], %112 {strides = array<i32>} : memref<1x8x32xf32, #tpu.memory_space<vmem>>, vector<1x8x32xf32>,
    return
  }
  func.func @transform_0(%arg0: i32, %arg1: i32) -> (i32, i32, i32) {
    %c0_i32 = arith.constant 0 : i32
    %c0_i32_0 = arith.constant 0 : i32
    return %arg0, %arg1, %c0_i32 : i32, i32, i32
  }
  func.func @transform_1(%arg0: i32, %arg1: i32) -> (i32, i32, i32) {
    %c0_i32 = arith.constant 0 : i32
    %c0_i32_0 = arith.constant 0 : i32
    %c0_i32_1 = arith.constant 0 : i32
    return %arg0, %c0_i32, %c0_i32_0 : i32, i32, i32
  }
  func.func @transform_2(%arg0: i32, %arg1: i32) -> (i32, i32) {
    %c0_i32 = arith.constant 0 : i32
    %c0_i32_0 = arith.constant 0 : i32
    %c0_i32_1 = arith.constant 0 : i32
    return %c0_i32, %c0_i32_0 : i32, i32
  }
  func.func @transform_3(%arg0: i32, %arg1: i32) -> (i32, i32) {
    %c0_i32 = arith.constant 0 : i32
    %c0_i32_0 = arith.constant 0 : i32
    %c0_i32_1 = arith.constant 0 : i32
    return %c0_i32, %c0_i32_0 : i32, i32
  }
  func.func @transform_4(%arg0: i32, %arg1: i32) -> (i32, i32) {
    %c0_i32 = arith.constant 0 : i32
    %c0_i32_0 = arith.constant 0 : i32
    %c0_i32_1 = arith.constant 0 : i32
    return %c0_i32, %c0_i32_0 : i32, i32
  }
  func.func @transform_5(%arg0: i32, %arg1: i32) -> (i32, i32) {
    %c0_i32 = arith.constant 0 : i32
    %c0_i32_0 = arith.constant 0 : i32
    %c0_i32_1 = arith.constant 0 : i32
    return %c0_i32, %c0_i32_0 : i32, i32
  }
  func.func @transform_6(%arg0: i32, %arg1: i32) -> (i32, i32) {
    %c0_i32 = arith.constant 0 : i32
    %c0_i32_0 = arith.constant 0 : i32
    %c0_i32_1 = arith.constant 0 : i32
    return %c0_i32, %c0_i32_0 : i32, i32
  }
  func.func @transform_7(%arg0: i32, %arg1: i32) -> (i32, i32) {
    %c0_i32 = arith.constant 0 : i32
    %c0_i32_0 = arith.constant 0 : i32
    %c0_i32_1 = arith.constant 0 : i32
    return %c0_i32, %c0_i32_0 : i32, i32
  }
  func.func @transform_8(%arg0: i32, %arg1: i32) -> (i32, i32) {
    %c0_i32 = arith.constant 0 : i32
    %c0_i32_0 = arith.constant 0 : i32
    %c0_i32_1 = arith.constant 0 : i32
    return %c0_i32, %c0_i32_0 : i32, i32
  }
  func.func @transform_9(%arg0: i32, %arg1: i32) -> (i32, i32) {
    %c0_i32 = arith.constant 0 : i32
    %c0_i32_0 = arith.constant 0 : i32
    %c0_i32_1 = arith.constant 0 : i32
    return %c0_i32, %c0_i32_0 : i32, i32
  }
  func.func @transform_10(%arg0: i32, %arg1: i32) -> (i32, i32) {
    %c0_i32 = arith.constant 0 : i32
    %c0_i32_0 = arith.constant 0 : i32
    %c0_i32_1 = arith.constant 0 : i32
    return %c0_i32, %c0_i32_0 : i32, i32
  }
  func.func @transform_11(%arg0: i32, %arg1: i32) -> (i32, i32) {
    %c0_i32 = arith.constant 0 : i32
    %c0_i32_0 = arith.constant 0 : i32
    %c0_i32_1 = arith.constant 0 : i32
    return %c0_i32, %c0_i32_0 : i32, i32
  }
  func.func @transform_12(%arg0: i32, %arg1: i32) -> (i32, i32) {
    %c0_i32 = arith.constant 0 : i32
    %c0_i32_0 = arith.constant 0 : i32
    %c0_i32_1 = arith.constant 0 : i32
    return %c0_i32, %c0_i32_0 : i32, i32
  }
  func.func @transform_13(%arg0: i32, %arg1: i32) -> (i32, i32) {
    %c0_i32 = arith.constant 0 : i32
    %c0_i32_0 = arith.constant 0 : i32
    %c0_i32_1 = arith.constant 0 : i32
    return %c0_i32, %c0_i32_0 : i32, i32
  }
  func.func @transform_14(%arg0: i32, %arg1: i32) -> (i32, i32) {
    %c0_i32 = arith.constant 0 : i32
    %c0_i32_0 = arith.constant 0 : i32
    %c0_i32_1 = arith.constant 0 : i32
    return %c0_i32, %c0_i32_0 : i32, i32
  }
  func.func @transform_15(%arg0: i32, %arg1: i32) -> (i32, i32) {
    %c0_i32 = arith.constant 0 : i32
    %c0_i32_0 = arith.constant 0 : i32
    %c0_i32_1 = arith.constant 0 : i32
    return %c0_i32, %c0_i32_0 : i32, i32
  }
  func.func @transform_16(%arg0: i32, %arg1: i32) -> (i32, i32, i32) {
    %c0_i32 = arith.constant 0 : i32
    %c0_i32_0 = arith.constant 0 : i32
    return %arg0, %arg1, %c0_i32 : i32, i32, i32
  }
}

</mosaic_0001>

<bundles_post_ra>
// kernel: tpu_custom_call.1
= control target key start
LH: loop header
LB: loop body
LE: loop exit
PB: predicated region body
PF: predicated region fallthrough
CT: control target
= control target key end

     0   :  { %s2468_s0 = inlined_call_operand.hbm [shape: f32[2,8,32], index: 0, kind: input, shape index: {}]   ;;  %s2469_s1 = inlined_call_operand.hbm [shape: f32[2,8,32], index: 1, kind: input, shape index: {}]   ;;  %s2470_s2 = inlined_call_operand.vmem [shape: f32[32,32], index: 2, kind: input, shape index: {}]   ;;  %s2471_s3 = inlined_call_operand.vmem [shape: f32[1,32], index: 3, kind: input, shape index: {}]   ;;  %s2472_s4 = inlined_call_operand.vmem [shape: f32[32,64], index: 4, kind: input, shape index: {}]   ;;  %s2473_s5 = inlined_call_operand.vmem [shape: f32[1,64], index: 5, kind: input, shape index: {}]   ;;  %s2474_s6 = inlined_call_operand.vmem [shape: f32[32,32], index: 6, kind: input, shape index: {}]   ;;  %s2475_s7 = inlined_call_operand.vmem [shape: f32[1,32], index: 7, kind: input, shape index: {}]   ;;  %s2476_s8 = inlined_call_operand.vmem [shape: f32[1,32], index: 8, kind: input, shape index: {}]   ;;  %s2477_s9 = inlined_call_operand.vmem [shape: f32[1,32], index: 9, kind: input, shape index: {}]   ;;  %s2478_s10 = inlined_call_operand.hbm [shape: f32[32,64], index: 10, kind: input, shape index: {}]   ;;  %s2479_s11 = inlined_call_operand.vmem [shape: f32[1,64], index: 11, kind: input, shape index: {}]   ;;  %s2480_s12 = inlined_call_operand.vmem [shape: f32[64,32], index: 12, kind: input, shape index: {}]   ;;  %s2481_s13 = inlined_call_operand.vmem [shape: f32[1,32], index: 13, kind: input, shape index: {}]   ;;  %s2482_s14 = inlined_call_operand.vmem [shape: f32[1,32], index: 14, kind: input, shape index: {}]   ;;  %s2483_s15 = inlined_call_operand.vmem [shape: f32[1,32], index: 15, kind: input, shape index: {}]   ;;  %s2484_s16 = inlined_call_operand.hbm [shape: f32[2,8,32], index: 16, kind: output, shape index: {}]  }
   0x1   :  { %2492 = sst [smem:[#allocation23_spill]] %s2468_s0 }
   0x2   :  { %2493 = sst [smem:[#allocation24_spill]] %s2476_s8 }
   0x3   :  { %2494 = sst [smem:[#allocation25_spill]] %s2477_s9 }
   0x4   :  { %2495 = sst [smem:[#allocation26_spill]] %s2478_s10 }
   0x5   :  { %2496 = sst [smem:[#allocation27_spill]] %s2479_s11 }
   0x6   :  { %2497 = sst [smem:[#allocation28_spill]] %s2481_s13 }
   0x7   :  { %2498 = sst [smem:[#allocation29_spill]] %s2482_s14 }
   0x8   :  { %2499 = sst [smem:[#allocation30_spill]] %s2483_s15 }
   0x9   :  { %2500 = sst [smem:[#allocation31_spill]] %s2484_s16 }
   0xa   :  { %21 = vsyncpa [#allocation7], 0 }
   0xb   :  { %23 = vsyncpa [#allocation7 + $0x1], 0 }
   0xc   :  { %24 = vsyncpa [#allocation10], 0 }
   0xd   :  { %26 = vsyncpa [#allocation10 + $0x1], 0 }
   0xe   :  { %27 = vsyncpa [#allocation8], 0 }
   0xf   :  { %29 = vsyncpa [#allocation8 + $0x1], 0  ;;  %s2115_s21 = smov 0   ;;  %s2117_s22 = smov 0  }
  0x10   :  { %s2119_s23 = smov 0   ;;  %s2121_s24 = smov 0  }
  0x11   :  { %s2123_s25 = smov 0   ;;  %s2125_s26 = smov 0  }
  0x12 LB: > { %2501 = sst [smem:[#allocation17_spill]] %s1996_s21  ;;  %s2146_s27 = sadd.s32 4294967295, %s2016_s26   ;;  %s2016_s26 = sphi %s2125_s26, %s35_s26   ;;  %s2012_s25 = sphi %s2123_s25, %s2531_s25   ;;  %s2008_s24 = sphi %s2121_s24, %s2530_s24   ;;  %s2004_s23 = sphi %s2119_s23, %s2534_s23   ;;  %s2000_s22 = sphi %s2117_s22, %s2533_s22   ;;  %s1996_s21 = sphi %s2115_s21, %s2532_s21  }
  0x13   : > { %2502 = sst [smem:[#allocation18_spill]] %s2008_s24  ;;  %s1591_s28 = sadd.s32 4294967294, %s2016_s26  }
  0x14   : > { %2503 = sst [smem:[#allocation19_spill]] %s2012_s25  ;;  %p69_p0 = scmp.ne.s32.totalorder %s2000_s22, %s1996_s21 }
  0x15   : > { %p70_p1 = scmp.eq.s32.totalorder %s2146_s27, 0  ;;  %p421_p3 = scmp.eq.s32.totalorder %s1591_s28, 1 }
  0x16   : > { %p1592_p5 = scmp.ge.s32.totalorder %s2016_s26, 1  ;;  %p428_p7 = scmp.lt.s32.totalorder %s2016_s26, 3 }
  0x17   : > { %p2155_p4 = por %p70_p1, %p69_p0  ;;  %p2160_p6 = por %p421_p3, %p69_p0 }
  0x18   : > { %p2165_p8 = pnand %p1592_p5, %p428_p7  ;;  %s2018_s17 = smov [#allocation11]  }
  0x19   : > { %s2505_s30 = scalar_select %p2160_p6, 1, 0 }
  0x1a   : > { %s464_s18 = sshll.u32 %s2018_s17, 4  ;;  %p1758_p9 = pneg %p2165_p8  ;;  %s465_s18 = int_to_ptr.vmem [resolvable:$true] %s464_s18 }
  0x1b   : > { %2506 = sst [smem:[#allocation20_spill]] %s2505_s30  ;;  %s47_s20 = sadd.s32 1, %s2012_s25 }
  0x1c   : > { %p2174_p11 = pnand %p1758_p9, %p70_p1  ;;  %s1857_s28 = scalar_lea.vmem %s465_s18, 512 }
  0x1d   : > { %p1858_p13 = scmp.ne.s32.totalorder %s465_s18, %s1857_s28  ;;  %p1865_p5 = scmp.lt.s32.totalorder %s465_s18, %s465_s18 }
  0x1e   : > { %p1848_p12 = pneg %p2174_p11  ;;  %p1866_p7 = scmp.lt.s32.totalorder %s1857_s28, %s1857_s28 }
  0x20   : > { %p1860_p0 = pnand %p1858_p13, %p1848_p12  ;;  %p1867_p2 = por %p1866_p7, %p1865_p5 }
  0x22   : > { %p1861_p3 = pneg %p1860_p0 }
  0x24   : > { %p1868_p6 = pnand %p1867_p2, %p1861_p3 }
  0x26   : > { %1871 = shalt.err (!%p1868_p6)
}
  0x27   : > { %s2019_s17 = smov 128   ;;  %s2020_s30 = smov 8  }
  0x28   : > { %s2509_s10 = sld [smem:[#allocation26_spill]]  ;;  %p49_p2 = scmp.ge.s32.totalorder %s47_s20, 2 }
  0x29   : > { %s56_s28 = sadd.s32 1, %s2004_s23  ;;  %p63_p6 = scmp.ne.s32.totalorder %s2004_s23, %s2000_s22 }
  0x2a   : > { %p64_p9 = scmp.eq.s32.totalorder %s2016_s26, 0  ;;  %s2536_s20 = smov (%p49_p2, %s47_s20), 0 }
  0x2b   : > { %2510 = sst [smem:[#allocation21_spill]] %s2536_s20  ;;  %p2512_p13 = scmp.eq.s32.totalorder %s2146_s27, 1 }
  0x2c   : > { %p2192_p12 = por %p64_p9, %p63_p6  ;;  %s51_s16 = ssub.s32 %s2012_s25, %s2536_s20 }
  0x2d   : > { %p2198_p0 = por %p2512_p13, %p63_p6  ;;  %p54_p3 = scmp.eq.s32.totalorder %s51_s16, 0 }
  0x2e   : > { %1761 = dma.hbm_to_vmem [thread:$0]  (!%p2174_p11), %s2509_s10, 512, %s465_s18, [#allocation10], %s2019_s17, %s2019_s17, %s2020_s30  }
  0x2f   : > { %s2513_s19 = scalar_select %p2198_p0, 1, 0 }
  0x30   : > { %p1774_p11 = scmp.lt.s32.totalorder %s2016_s26, 2  ;;  %s493_s21 = sand.u32 1, %s2004_s23  }
  0x31   : > { %2514 = sst [smem:[#allocation22_spill]] %s2513_s19  ;;  %s1595_s30 = sshll.u32 %s493_s21, 3 }
  0x32   : > { %s2207_s18 = scalar_select %p54_p3, %s2004_s23, %s56_s28  }
  0x33   : > { %s1596_s17 = sshll.u32 %s2012_s25, 7  ;;  %s2515_s24 = sld [smem:[#allocation23_spill]] }
  0x34   : > { %s497_s11 = scalar_lea.vmem [#allocation6], %s1595_s30  ;;  %p2215_p5 = pnand %p1774_p11, %p2192_p12 }
  0x35   : > { %s505_s9 = sshll.u32 %s497_s11, 4  ;;  %s2222_s28 = scalar_lea.hbm %s2469_s1, %s1596_s17  ;;  %s506_s9 = int_to_ptr.vmem [resolvable:$true] %s505_s9 }
  0x36   : > { %s512_s16 = sand.u32 1, %s2016_s26   ;;  %s494_s25 = scalar_lea.sflag [#allocation7], %s493_s21 }
  0x37   : > { %p1874_p7 = pneg %p2215_p5  ;;  %s1885_s10 = scalar_lea.vmem %s506_s9, 128 }
  0x38   : > { %p1886_p2 = scmp.ne.s32.totalorder %s506_s9, %s1885_s10  ;;  %s2021_s11 = smov [#allocation6]  }
  0x39   : > { %s503_s13 = scalar_lea.hbm %s2515_s24, %s1596_s17  ;;  %s1890_s14 = sshll.u32 %s2021_s11, 4  ;;  %s1891_s14 = int_to_ptr.vmem [resolvable:$false] %s1890_s14 }
  0x3a   : > { %p1888_p6 = pnand %p1886_p2, %p1874_p7  ;;  %s1892_s15 = scalar_lea.vmem %s1891_s14, 256 }
  0x3b   : > { %p1893_p12 = scmp.lt.s32.totalorder %s506_s9, %s1891_s14  ;;  %p1894_p13 = scmp.lt.s32.totalorder %s1892_s15, %s1885_s10 }
  0x3c   : > { %p1889_p9 = pneg %p1888_p6 }
  0x3d   : > { %p1895_p11 = por %p1894_p13, %p1893_p12 }
  0x3f   : > { %p1896_p3 = pnand %p1895_p11, %p1889_p9 }
  0x41   : > { %1899 = shalt.err (!%p1896_p3)
}
  0x42   : > { %1765 = dma.hbm_to_vmem [thread:$0]  (!%p2215_p5), %s503_s13, 128, %s506_s9, %s494_s25  }
  0x43   : > { %s516_s24 = scalar_lea.vmem [#allocation9], %s1595_s30  ;;  %s513_s19 = scalar_lea.sflag [#allocation10], %s512_s16 }
  0x44   : > { %s523_s20 = sshll.u32 %s516_s24, 4  ;;  %s2022_s17 = smov [#allocation9]   ;;  %s524_s20 = int_to_ptr.vmem [resolvable:$true] %s523_s20 }
  0x45   : > { %s1913_s21 = scalar_lea.vmem %s524_s20, 128  ;;  %s1918_s11 = sshll.u32 %s2022_s17, 4  ;;  %s1919_s11 = int_to_ptr.vmem [resolvable:$false] %s1918_s11 }
  0x46   : > { %p1914_p2 = scmp.ne.s32.totalorder %s524_s20, %s1913_s21  ;;  %s1920_s10 = scalar_lea.vmem %s1919_s11, 256 }
  0x47   : > { %p1921_p9 = scmp.lt.s32.totalorder %s524_s20, %s1919_s11  ;;  %p1922_p12 = scmp.lt.s32.totalorder %s1920_s10, %s1913_s21 }
  0x48   : > { %p1916_p6 = pnand %p1914_p2, %p1874_p7 }
  0x49   : > { %p1923_p13 = por %p1922_p12, %p1921_p9 }
  0x4a   : > { %p1917_p10 = pneg %p1916_p6 }
  0x4c   : > { %p1924_p11 = pnand %p1923_p13, %p1917_p10 }
  0x4e   : > { %1927 = shalt.err (!%p1924_p11)
}
  0x4f   : > { %1768 = dma.hbm_to_vmem [thread:$0]  (!%p2215_p5), %s2222_s28, 128, %s524_s20, %s513_s19  }
  0x50   : > { %532 = sbr.rel (%p2165_p8) target bundleno = 2316 (0x90c), region = 84  ;;  %s2241_s9 = sand.u32 (!%p2165_p8), 1, %s2000_s22  }
  0x51   : > { %s2244_s13 = sshll.u32 (!%p2165_p8), %s2241_s9, 3  ;;  %s535_s25 = scalar_lea.sflag (!%p2165_p8), [#allocation7], %s2241_s9 }
  0x52   : > { %s538_s30 = scalar_lea.vmem (!%p2165_p8), [#allocation6], %s2244_s13 }
  0x55   : > { %1979 = dma.done.wait (%p2155_p4), %s535_s25, 128  }
  0x56   : > { %1981 = vsyncadd (%p2155_p4), %s535_s25, 4294967168  ;;  %s543_s8 = sand.u32 1, %s2146_s27   ;;  %s547_s28 = scalar_lea.vmem [#allocation9], %s2244_s13 }
  0x57   : > { %s544_s0 = scalar_lea.sflag [#allocation10], %s543_s8 }
  0x58   : > { %1983 = dma.done.wait (%p2155_p4), %s544_s0, 128  }
  0x59   : > { %1985 = vsyncadd (%p2155_p4), %s544_s0, 4294967168 }
  0x5a   : > { %1987 = dma.done.wait (%p70_p1), [#allocation10], 512  }
  0x5b   : > { %1989 = vsyncadd (%p70_p1), [#allocation10], 4294966784  ;;  %v2023_v0 = vmov 0.0   ;;  %vm2024_vm0 = vmmov 0   ;;  %v614_v1 = vld [vmem:[%s2472_s4 + $0x18] sm:$0xff]  ;;  %v613_v2 = vld [vmem:[%s2472_s4 + $0x10] sm:$0xff] }
  0x5c   : > { %1665 = vmatprep.subr.mxu1 %v2023_v0  ;;  %1673 = vmatprep.mubr.msk.f32.mxu1 %vm2024_vm0, %v2023_v0  ;;  %v612_v3 = vld [vmem:[%s2472_s4 + $0x8] sm:$0xff]  ;;  %v611_v4 = vld [vmem:[%s2472_s4] sm:$0xff]  ;;  %vm622_vm1 = vcmask 261120   ;;  %v716_v6 = vld [vmem:[%s2470_s2 + $0x18] sm:$0xff]  ;;  %vm696_vm2 = vcmask 130048   ;;  %vm962_vm3 = vcmask 64512  }
  0x5d   : > { %1687 = vmatprep.subr.mxu0 %v2023_v0  ;;  %1689 = vmatprep.mubr.msk.f32.mxu0 %vm2024_vm0, %v2023_v0  ;;  %v610_v5 = vld [vmem:[%s547_s28] sm:$0xff]  ;;  %v713_v9 = vld [vmem:[%s2470_s2] sm:$0xff]  ;;  %s2026_s27 = smov 80   ;;  %s2027_s24 = smov 96   ;;  %v1144_v47 = vld [vmem:[%s2474_s6 + $0x18] sm:$0xff]  ;;  %vm1138_vm4 = vcmask 261248  }
  0x5e   : > { %1666 = vmatpush3.msra.mxu1 %v614_v1  ;;  %v715_v7 = vld [vmem:[%s2470_s2 + $0x10] sm:$0xff]  ;;  %v714_v8 = vld [vmem:[%s2470_s2 + $0x8] sm:$0xff]  ;;  %v2303_v10 = vld [vmem:[%s538_s30] sm:$0xff]  ;;  %s2025_s30 = smov 112   ;;  %s2028_s0 = smov 16   ;;  %vm1358_vm6 = vcmask 523264  }
  0x5f   : > { %1667 = vmatprep.subr.mxu1 %v2023_v0  ;;  %v1604_v11 = vld [vmem:[%s2473_s5] ss:$0 sm:$0xff]  ;;  %v1143_v48 = vld [vmem:[%s2474_s6 + $0x10] sm:$0xff]  ;;  %v1142_v49 = vld [vmem:[%s2474_s6 + $0x8] sm:$0xff]  ;;  %s2517_s25 = sld [smem:[#allocation24_spill]]  ;;  %s604_s15 = scalar_lea.vmem [#allocation12], %s2244_s13 }
  0x60   : > { %1668 = vmatpush3.msra.mxu1 %v613_v2  ;;  %v1606_v15 = vld [vmem:[%s2471_s3] ss:$0 sm:$0xff]  ;;  %s2518_s28 = sld [smem:[#allocation25_spill]]  ;;  %s1464_s17 = scalar_lea.sflag [#allocation8], %s2241_s9 }
  0x61   : > { %1669 = vmatprep.subr.mxu1 %v2023_v0  ;;  %v1141_v50 = vld [vmem:[%s2474_s6] sm:$0xff]  ;;  %s2519_s19 = sld [smem:[#allocation27_spill]]  ;;  %s2029_s8 = smov [#allocation12]  }
  0x62   : > { %1670 = vmatpush3.msra.mxu1 %v612_v3  ;;  %v1614_v61 = vld [vmem:[%s2475_s7] ss:$0 sm:$0xff]  ;;  %s2520_s11 = sld [smem:[#allocation28_spill]] }
  0x63   : > { %1671 = vmatprep.subr.mxu1 %v2023_v0  ;;  %s2521_s10 = sld [smem:[#allocation18_spill]] }
  0x64   : > { %1672 = vmatpush3.msra.mxu1 %v611_v4 }
  0x65   : > { %1674 = vmatmul.mubr.msk.f32.vlgmr.msra.gmra.mxu1 %vm622_vm1, %v610_v5  ;;  %1676 = vmatprep.subr.mxu1 %v2023_v0 }
  0x66   : > { %1677 = vmatpush3.msra.mxu1 %v716_v6  ;;  %1684 = vmatprep.mubr.msk.f32.mxu1 %vm2024_vm0, %v2023_v0 }
  0x67   : > { %1678 = vmatprep.subr.mxu1 %v2023_v0 }
  0x68   : > { %1679 = vmatpush3.msra.mxu1 %v715_v7 }
  0x69   : > { %1680 = vmatprep.subr.mxu1 %v2023_v0  ;;  %s1625_s14 = sshll.u32 %s2521_s10, 7 }
  0x6a   : > { %1681 = vmatpush3.msra.mxu1 %v714_v8 }
  0x6b   : > { %1682 = vmatprep.subr.mxu1 %v2023_v0 }
  0x6c   : > { %1683 = vmatpush3.msra.mxu1 %v713_v9  ;;  %v1259_v9 = vld [vmem:[#allocation11 + $0x18] sm:$0xff] }
  0x6d   : > { %1685 = vmatmul.mubr.msk.f32.vlgmr.msra.gmra.mxu1 %vm622_vm1, %v2303_v10  ;;  %1692 = vmatprep.subr.mxu1 %v2023_v0 }
  0x6e   : > { %1694 = vmatprep.mubr.msk.f32.mxu1 %vm2024_vm0, %v2023_v0 }
 0x125   : > { %v692_v12 = vpop.f32.mrf.mxu1 }
 0x126   : > { %v693_v13 = vadd.f32 %v1604_v11, %v692_v12  ;;  %v1258_v11 = vld [vmem:[#allocation11 + $0x10] sm:$0xff]  ;;  %v1257_v12 = vld [vmem:[#allocation11 + $0x8] sm:$0xff] }
 0x127   : > { %v1675_v14 = vpop.f32.mrf.mxu1 }
 0x128   : > { %697 = vst.msk [vmem:[#allocation2] sm:$0xff] %vm696_vm2, %v693_v13  ;;  %703 = vrot.lane.b32.xlu0 %v693_v13, %s2025_s30  ;;  %v1349_v14 = vld [vmem:[%s2480_s12 + $0x30] sm:$0xff] }
 0x12d   : > { %v794_v16 = vpop.f32.mrf.mxu1 }
 0x12e   : > { %v795_v17 = vadd.f32 %v1606_v15, %v794_v16  ;;  %v1348_v15 = vld [vmem:[%s2480_s12 + $0x28] sm:$0xff]  ;;  %v1347_v16 = vld [vmem:[%s2480_s12 + $0x20] sm:$0xff] }
 0x12f   : > { %v1686_v18 = vpop.f32.mrf.mxu1  ;;  %v808_v19 = vld [vmem:[#allocation2] sm:$0xff] }
 0x130   : > { %799 = vst.msk [vmem:[#allocation4] sm:$0xff] %vm696_vm2, %v795_v17  ;;  %801 = vrot.lane.b32.xlu0 %v795_v17, %s2025_s30  ;;  %1688 = vmatpush3.xpose.msk.msra.mxu0 %vm696_vm2, %v808_v19  ;;  %v1346_v17 = vld [vmem:[%s2480_s12 + $0x18] sm:$0xff]  ;;  %s2524_s30 = sld [smem:[#allocation30_spill]] }
 0x131   : > { %1697 = vmatprep.subr.mxu0 %v2023_v0 }
 0x137   : > { %v806_v20 = vld [vmem:[#allocation4] sm:$0xff] }
 0x138   : > { %1690 = vmatmul.mubr.msk.f32.vlgmr.msra.gmra.mxu0 %vm696_vm2, %v806_v20 }
 0x139   : > { %1699 = vmatprep.mubr.msk.f32.mxu0 %vm2024_vm0, %v2023_v0 }
 0x19a   : > { %v704_v21 = vpop.permute.xlu0 %703 }
 0x19b   : > { %707 = vst.msk [vmem:[#allocation2 + $0x8] sm:$0xff] %vm696_vm2, %v704_v21 }
 0x1a2   : > { %v802_v22 = vpop.permute.xlu0 %801  ;;  %v809_v23 = vld [vmem:[#allocation2 + $0x8] sm:$0xff] }
 0x1a3   : > { %805 = vst.msk [vmem:[#allocation4 + $0x8] sm:$0xff] %vm696_vm2, %v802_v22  ;;  %1693 = vmatpush3.xpose.msk.msra.mxu1 %vm696_vm2, %v809_v23  ;;  %v1616_v22 = vld [vmem:[%s2517_s25] ss:$0 sm:$0xff] }
 0x1a4   : > { %1702 = vmatprep.subr.mxu1 %v2023_v0 }
 0x1aa   : > { %v807_v24 = vld [vmem:[#allocation4 + $0x8] sm:$0xff] }
 0x1ab   : > { %1695 = vmatmul.mubr.msk.f32.vlgmr.msra.gmra.mxu1 %vm696_vm2, %v807_v24  ;;  %v1617_v24 = vld [vmem:[%s2518_s28] ss:$0 sm:$0xff]  ;;  %s2523_s28 = sld [smem:[#allocation29_spill]] }
 0x1ac   : > { %1704 = vmatprep.mubr.msk.f32.mxu1 %vm2024_vm0, %v2023_v0 }
 0x1f8   : > { %v882_v25 = vpop.f32.mrf.mxu0 }
 0x1f9   : > { %v963_v26 = vsel %vm962_vm3, %v882_v25, -inf }
 0x1fa   : > { %964 = vmax.xlane.f32.xlu0 %v963_v26  ;;  %v1691_v27 = vpop.f32.mrf.mxu0 }
 0x1fb   : > { %v1345_v27 = vld [vmem:[%s2480_s12 + $0x10] sm:$0xff] }
 0x26b   : > { %v958_v28 = vpop.f32.mrf.mxu1 }
 0x26c   : > { %v966_v29 = vsel %vm962_vm3, %v958_v28, -inf }
 0x26d   : > { %967 = vmax.xlane.f32.xlu1 %v966_v29  ;;  %v1696_v30 = vpop.f32.mrf.mxu1  ;;  %v1343_v29 = vld [vmem:[%s2480_s12] sm:$0xff] }
 0x26e   : > { %v1618_v30 = vld [vmem:[%s2519_s19] ss:$0 sm:$0xff]  ;;  %s2525_s19 = sld [smem:[#allocation31_spill]] }
 0x274   : > { %s1476_s21 = scalar_lea.hbm %s2525_s19, %s1625_s14 }
 0x27e   : > { %708 = vrot.lane.b32.xlu1 %v693_v13, %s2026_s27  ;;  %s1478_s27 = sshll.u32 %s604_s15, 4  ;;  %s1479_s27 = int_to_ptr.vmem [resolvable:$true] %s1478_s27 }
 0x282   : > { %699 = vrot.lane.b32.xlu1 %v693_v13, %s2027_s24  ;;  %v1350_v13 = vld [vmem:[%s2480_s12 + $0x38] sm:$0xff] }
 0x283   : > { %v965_v31 = vpop.xlane.xlu0 %964 }
 0x284   : > { %v969_v32 = vsub.f32 %v882_v25, %v965_v31 }
 0x286   : > { %v971_v33 = vmul.f32 1.442695, %v969_v32 }
 0x288   : > { %1834 = vpow2.f32 %v971_v33 }
 0x295   : > { %v1835_v34 = vpop.eup %1834 }
 0x296   : > { %v975_v35 = vsel %vm962_vm3, %v1835_v34, 0.0 }
 0x297   : > { %976 = vadd.xlane.f32.xlu0 %v975_v35 }
 0x2f6   : > { %v968_v36 = vpop.xlane.xlu1 %967 }
 0x2f7   : > { %v970_v37 = vsub.f32 %v958_v28, %v968_v36  ;;  %v1344_v28 = vld [vmem:[%s2480_s12 + $0x8] sm:$0xff] }
 0x2f9   : > { %v973_v38 = vmul.f32 1.442695, %v970_v37 }
 0x2fa   : > { %v709_v39 = vpop.permute.xlu1 %708 }
 0x2fb   : > { %1836 = vpow2.f32 %v973_v38  ;;  %712 = vst.msk [vmem:[#allocation3 + $0x8] sm:$0xff] %vm696_vm2, %v709_v39 }
 0x2fe   : > { %v700_v40 = vpop.permute.xlu1 %699 }
 0x2ff   : > { %702 = vst.msk [vmem:[#allocation3] sm:$0xff] %vm696_vm2, %v700_v40 }
 0x302   : > { %v982_v41 = vld [vmem:[#allocation3 + $0x8] sm:$0xff] }
 0x303   : > { %1703 = vmatpush3.msra.mxu1 %v982_v41 }
 0x304   : > { %1718 = vmatprep.subr.mxu1 %v2023_v0 }
 0x306   : > { %v981_v42 = vld [vmem:[#allocation3] sm:$0xff] }
 0x307   : > { %1698 = vmatpush3.msra.mxu0 %v981_v42 }
 0x308   : > { %v1837_v43 = vpop.eup %1836  ;;  %1700 = vmatmul.mubr.msk.f32.vlgmr.msra.gmra.mxu0 %vm962_vm3, %v1835_v34  ;;  %1707 = vmatprep.subr.mxu0 %v2023_v0 }
 0x309   : > { %1705 = vmatmul.mubr.msk.f32.vlgmr.msra.gmra.mxu1 %vm962_vm3, %v1837_v43  ;;  %v978_v44 = vsel %vm962_vm3, %v1837_v43, 0.0  ;;  %1715 = vmatprep.mubr.msk.f32.mxu0 %vm2024_vm0, %v2023_v0 }
 0x30a   : > { %979 = vadd.xlane.f32.xlu1 %v978_v44  ;;  %1726 = vmatprep.mubr.msk.f32.mxu1 %vm2024_vm0, %v2023_v0 }
 0x30b   : > { %1708 = vmatpush3.msra.mxu0 %v1144_v47  ;;  %1719 = vmatpush3.msra.mxu1 %v1259_v9 }
 0x30c   : > { %1709 = vmatprep.subr.mxu0 %v2023_v0  ;;  %1720 = vmatprep.subr.mxu1 %v2023_v0 }
 0x30d   : > { %1710 = vmatpush3.msra.mxu0 %v1143_v48  ;;  %1721 = vmatpush3.msra.mxu1 %v1258_v11 }
 0x30e   : > { %1711 = vmatprep.subr.mxu0 %v2023_v0  ;;  %1722 = vmatprep.subr.mxu1 %v2023_v0 }
 0x30f   : > { %1712 = vmatpush3.msra.mxu0 %v1142_v49  ;;  %1723 = vmatpush3.msra.mxu1 %v1257_v12 }
 0x310   : > { %1713 = vmatprep.subr.mxu0 %v2023_v0  ;;  %1724 = vmatprep.subr.mxu1 %v2023_v0 }
 0x311   : > { %1714 = vmatpush3.msra.mxu0 %v1141_v50  ;;  %v1622_v50 = vld [vmem:[%s2523_s28] ss:$0 sm:$0xff] }
 0x312   : > { %1729 = vmatprep.subr.mxu0 %v2023_v0 }
 0x320   : > { %v977_v45 = vpop.xlane.xlu0 %976 }
 0x321   : > { %1838 = vrcp.f32 %v977_v45 }
 0x32e   : > { %v1839_v51 = vpop.eup %1838 }
 0x393   : > { %v980_v46 = vpop.xlane.xlu1 %979 }
 0x394   : > { %1840 = vrcp.f32 %v980_v46 }
 0x3a1   : > { %v1841_v53 = vpop.eup %1840 }
 0x3c8   : > { %v1052_v52 = vpop.f32.mrf.mxu0 }
 0x3c9   : > { %v1131_v54 = vmul.f32 %v1839_v51, %v1052_v52  ;;  %v1125_v55 = vpop.f32.mrf.mxu1  ;;  %v1623_v52 = vld [vmem:[%s2524_s30] ss:$0 sm:$0xff] }
 0x3ca   : > { %v1132_v56 = vmul.f32 %v1841_v53, %v1125_v55  ;;  %v1701_v57 = vpop.f32.mrf.mxu0 }
 0x3cb   : > { %1133 = vst.msk [vmem:[#allocation5] sm:$0xff] %vm696_vm2, %v1131_v54  ;;  %v1706_v58 = vpop.f32.mrf.mxu1 }
 0x3cc   : > { %1135 = vrot.lane.b32.xlu0 %v1132_v56, %s2028_s0  ;;  %s1932_s0 = sshll.u32 %s2029_s8, 4  ;;  %s1933_s0 = int_to_ptr.vmem [resolvable:$false] %s1932_s0 }
 0x3cd   : > { %s1934_s13 = scalar_lea.vmem %s1933_s0, 256  ;;  %p1935_p10 = scmp.lt.s32.totalorder %s1479_s27, %s1933_s0 }
 0x43e   : > { %v1136_v59 = vpop.permute.xlu0 %1135 }
 0x43f   : > { %1139 = vst.msk [vmem:[#allocation5] sm:$0xff] %vm1138_vm4, %v1136_v59 }
 0x446   : > { %v1140_v60 = vld [vmem:[#allocation5] sm:$0xff] }
 0x447   : > { %1716 = vmatmul.mubr.msk.f32.vlgmr.msra.gmra.mxu0 %vm622_vm1, %v1140_v60 }
 0x448   : > { %1745 = vmatprep.mubr.msk.f32.mxu0 %vm2024_vm0, %v2023_v0  ;;  %1730 = vmatpush3.msra.mxu0 %v1350_v13 }
 0x449   : > { %1731 = vmatprep.subr.mxu0 %v2023_v0 }
 0x44a   : > { %1732 = vmatpush3.msra.mxu0 %v1349_v14 }
 0x44b   : > { %1733 = vmatprep.subr.mxu0 %v2023_v0 }
 0x44c   : > { %1734 = vmatpush3.msra.mxu0 %v1348_v15 }
 0x44d   : > { %1735 = vmatprep.subr.mxu0 %v2023_v0 }
 0x44e   : > { %1736 = vmatpush3.msra.mxu0 %v1347_v16 }
 0x44f   : > { %1737 = vmatprep.subr.mxu0 %v2023_v0 }
 0x450   : > { %1738 = vmatpush3.msra.mxu0 %v1346_v17 }
 0x451   : > { %1739 = vmatprep.subr.mxu0 %v2023_v0 }
 0x452   : > { %1740 = vmatpush3.msra.mxu0 %v1345_v27 }
 0x453   : > { %1741 = vmatprep.subr.mxu0 %v2023_v0 }
 0x454   : > { %1742 = vmatpush3.msra.mxu0 %v1344_v28 }
 0x455   : > { %1743 = vmatprep.subr.mxu0 %v2023_v0  ;;  %v1620_v0 = vld [vmem:[%s2520_s11] ss:$0 sm:$0xff]  ;;  %s1928_s11 = scalar_lea.vmem %s1479_s27, 128 }
 0x456   : > { %1744 = vmatpush3.msra.mxu0 %v1343_v29  ;;  %p1929_p1 = scmp.ne.s32.totalorder %s1479_s27, %s1928_s11  ;;  %p1936_p5 = scmp.lt.s32.totalorder %s1934_s13, %s1928_s11 }
 0x458   : > { %p1930_p4 = pnand %p1929_p1, %p2198_p0  ;;  %p1937_p7 = por %p1936_p5, %p1935_p10 }
 0x45a   : > { %p1931_p8 = pneg %p1930_p4 }
 0x45c   : > { %p1938_p3 = pnand %p1937_p7, %p1931_p8 }
 0x507   : > { %v1221_v62 = vpop.f32.mrf.mxu0 }
 0x508   : > { %v1222_v63 = vadd.f32 %v1614_v61, %v1221_v62 }
 0x509   : > { %v1717_v1 = vpop.f32.mrf.mxu0 }
 0x50a   : > { %v1225_v2 = vadd.f32 %v1222_v63, %v2303_v10  ;;  %v1256_v10 = vld [vmem:[#allocation11] sm:$0xff] }
 0x50b   : > { %1725 = vmatpush3.msra.mxu1 %v1256_v10 }
 0x50c   : > { %v1228_v3 = vsel %vm622_vm1, %v1225_v2, 0.0 }
 0x50d   : > { %1229 = vadd.xlane.f32.xlu1 %v1228_v3 }
 0x596   : > { %v1230_v4 = vpop.xlane.xlu1 %1229 }
 0x597   : > { %v1232_v5 = vmul.f32 0.03125, %v1230_v4 }
 0x599   : > { %v1233_v6 = vsub.f32 %v1225_v2, %v1232_v5 }
 0x59b   : > { %v1234_v7 = vmul.f32 %v1233_v6, %v1233_v6 }
 0x59d   : > { %v1235_v8 = vsel %vm622_vm1, %v1234_v7, 0.0 }
 0x59e   : > { %1236 = vadd.xlane.f32.xlu0 %v1235_v8 }
 0x627   : > { %v1237_v18 = vpop.xlane.xlu0 %1236 }
 0x628   : > { %v1238_v19 = vmul.f32 0.03125, %v1237_v18 }
 0x62a   : > { %v1239_v20 = vadd.f32 1e-05, %v1238_v19 }
 0x62c   : > { %1842 = vrsqrt.f32 %v1239_v20 }
 0x639   : > { %v1843_v21 = vpop.eup %1842 }
 0x63a   : > { %v1241_v23 = vmul.f32 %v1843_v21, %v1233_v6 }
 0x63c   : > { %v1248_v25 = vmul.f32 %v1616_v22, %v1241_v23 }
 0x63e   : > { %v1255_v26 = vadd.f32 %v1617_v24, %v1248_v25 }
 0x640   : > { %1727 = vmatmul.mubr.msk.f32.vlgmr.msra.gmra.mxu1 %vm622_vm1, %v1255_v26 }
 0x700   : > { %v1336_v31 = vpop.f32.mrf.mxu1 }
 0x701   : > { %v1337_v32 = vadd.f32 %v1618_v30, %v1336_v31 }
 0x702   : > { %v1728_v33 = vpop.f32.mrf.mxu1 }
 0x703   : > { %vm1340_vm5 = vcmp.ge.f32.partialorder %v1337_v32, 0.0  ;;  %v1341_v34 = vmul.f32 0.01, %v1337_v32 }
 0x705   : > { %v1342_v35 = vsel %vm1340_vm5, %v1337_v32, %v1341_v34 }
 0x706   : > { %1746 = vmatmul.mubr.msk.f32.vlgmr.msra.gmra.mxu0 %vm1358_vm6, %v1342_v35 }
 0x7c6   : > { %v1428_v36 = vpop.f32.mrf.mxu0 }
 0x7c7   : > { %v1429_v37 = vadd.f32 %v1620_v0, %v1428_v36 }
 0x7c8   : > { %v1747_v38 = vpop.f32.mrf.mxu0 }
 0x7c9   : > { %v1432_v39 = vadd.f32 %v1429_v37, %v1255_v26 }
 0x7cb   : > { %v1435_v40 = vsel %vm622_vm1, %v1432_v39, 0.0 }
 0x7cc   : > { %1436 = vadd.xlane.f32.xlu1 %v1435_v40 }
 0x855   : > { %v1437_v41 = vpop.xlane.xlu1 %1436 }
 0x856   : > { %v1438_v42 = vmul.f32 0.03125, %v1437_v41 }
 0x858   : > { %v1439_v43 = vsub.f32 %v1432_v39, %v1438_v42 }
 0x85a   : > { %v1440_v44 = vmul.f32 %v1439_v43, %v1439_v43 }
 0x85c   : > { %v1441_v45 = vsel %vm622_vm1, %v1440_v44, 0.0 }
 0x85d   : > { %1442 = vadd.xlane.f32.xlu1 %v1441_v45 }
 0x8e6   : > { %v1443_v46 = vpop.xlane.xlu1 %1442 }
 0x8e7   : > { %v1444_v47 = vmul.f32 0.03125, %v1443_v46 }
 0x8e9   : > { %v1445_v48 = vadd.f32 1e-05, %v1444_v47 }
 0x8eb   : > { %1844 = vrsqrt.f32 %v1445_v48 }
 0x8f8   : > { %v1845_v49 = vpop.eup %1844 }
 0x8f9   : > { %v1447_v51 = vmul.f32 %v1845_v49, %v1439_v43 }
 0x8fb   : > { %v1454_v53 = vmul.f32 %v1622_v50, %v1447_v51 }
 0x8fd   : > { %v1461_v54 = vadd.f32 %v1623_v52, %v1454_v53 }
 0x8ff   : > { %1462 = vst.msk [vmem:[%s604_s15] sm:$0xff] %vm622_vm1, %v1461_v54 }
 0x900   : > { %1941 = shalt.err (!%p1938_p3)
}
 0x901   : > { %s1942_s10 = scalar_lea.hbm %s1476_s21, 128  ;;  %s1946_s29 = scalar_lea.hbm %s2525_s19, 256 }
 0x902   : > { %p1943_p2 = scmp.ne.s32.totalorder %s1476_s21, %s1942_s10  ;;  %p1947_p12 = scmp.lt.s32.totalorder %s1476_s21, %s2525_s19 }
 0x903   : > { %p1948_p13 = scmp.lt.s32.totalorder %s1946_s29, %s1942_s10 }
 0x904   : > { %p1944_p6 = pnand %p1943_p2, %p2198_p0 }
 0x905   : > { %p1949_p11 = por %p1948_p13, %p1947_p12 }
 0x906   : > { %p1945_p9 = pneg %p1944_p6 }
 0x908   : > { %p1950_p1 = pnand %p1949_p11, %p1945_p9 }
 0x90a   : > { %1953 = shalt.err (!%p1950_p1)
}
 0x90b   : > { %1756 = dma.vmem_to_hbm [thread:$0]  (%p2198_p0), %s1479_s27, 128, %s1476_s21, %s1464_s17  }
 0x90c PF: > { %s2526_s14 = sld [smem:[#allocation17_spill]]  ;;  %p2529_p8 = scmp.ge.s32.totalorder %s2016_s26, 2 }
 0x90d   : > { %s2527_s15 = sld [smem:[#allocation20_spill]] }
 0x912   : > { %s1490_s24 = sand.u32 1, %s2526_s14  }
 0x913   : > { %p2528_p4 = scmp.ne.s32.totalorder %s2527_s15, 0  ;;  %s1491_s20 = scalar_lea.sflag [#allocation8], %s1490_s24 }
 0x915   : > { %p1770_p10 = pnand %p2529_p8, %p2528_p4 }
 0x917   : > { %p1771_p5 = pneg %p1770_p10 }
 0x919   : > { %1991 = dma.done.wait (%p1771_p5), %s1491_s20, 128  }
 0x91a   : > { %1993 = vsyncadd (%p1771_p5), %s1491_s20, 4294967168  ;;  %s35_s26 = sadd.s32 1, %s2016_s26   ;;  %s2530_s24 = sld [smem:[#allocation19_spill]] }
 0x91b   : > { %p32_p7 = scmp.ge.s32.totalorder %s35_s26, 4   ;;  %s2531_s25 = sld [smem:[#allocation21_spill]] }
 0x91c   : > { %s2532_s21 = smov %s2000_s22  ;;  %s2533_s22 = smov %s2004_s23 }
 0x91d   : > { %s2534_s23 = smov %s2207_s18  ;;  %34 = sbr.rel (!%p32_p7) target bundleno = 18 (0x12), region = 153 }
 0x922   :  { %1496 = vsyncpa [#allocation7], 1 }
 0x923   :  { %1498 = vsyncpa [#allocation7 + $0x1], 1 }
 0x924   :  { %1499 = vsyncpa [#allocation10], 1 }
 0x925   :  { %1501 = vsyncpa [#allocation10 + $0x1], 1 }
 0x926   :  { %1502 = vsyncpa [#allocation8], 1 }
 0x927   :  { %1504 = vsyncpa [#allocation8 + $0x1], 1 }

</bundles_post_ra>
